<compile_context>
chip_gen: v7x
topology: tpu7x:2x2x1
jax: 0.10.0
libtpu: 0.0.40
codegen_flags: <defaults>
</compile_context>

<pallas_src>
import functools

import jax
import jax.numpy as jnp
from jax import lax
from jax.experimental import pallas as pl
from jax.experimental.pallas import tpu as pltpu

_MIB = 1024 * 1024


def _ceil_div(a, b):
    return -(-a // b)


@functools.lru_cache(maxsize=None)
def _physical_vmem_bytes():
    """Per-TensorCore VMEM capacity; conservative 64 MiB (v7x) fallback."""
    try:
        info = pltpu.get_tpu_info()
        v = int(getattr(info, "vmem_capacity_bytes", 0) or 0)
        if v > 0:
            return v
    except Exception:
        pass
    return 64 * _MIB


def _choose_tiling(d, itemsize, n_segment, t_out, n_batch, budget_bytes):
    """Pick a (r_dim, c_dim) reshape of the flat per-frame payload d and a
    (tr, tc) block tile.

    Rules:
      * c_dim is a multiple of 128 whenever a pure row-major reshape allows it
        (lane-dense stores); otherwise the payload stays flat (r_dim == 1) and
        the lane axis is tiled in multiples of 128 (masked ragged tail).
      * tr is a multiple of 8 or equals r_dim; tc is a multiple of 128 or
        equals c_dim (TPU (8,128) block rule).
      * The double-buffered (input + output) block footprint targets
        `budget_bytes`, and the grid gets >= 2 parallel steps when the shape
        allows it (v7x megacore).
    """
    frames = n_segment + t_out  # input frames + output frames per block

    # ---- factor d into (r_dim, c_dim) with a lane-dense last axis ----------
    if d % 128 == 0:
        c_dim = 128
        for cand in range(2048, 127, -128):   # largest mult-of-128 divisor <= 2048
            if d % cand == 0:
                c_dim = cand
                break
        r_dim = d // c_dim
    else:
        # No divisor of d can be a multiple of 128; keep the payload flat and
        # tile the lane axis directly (ragged tail handled by Pallas masking).
        r_dim, c_dim = 1, d

    def blk_bytes(tr, tc):
        # x2: input and output blocks are both double-buffered by the pipeline.
        return 2 * frames * tr * tc * itemsize

    tr, tc = r_dim, c_dim

    # ---- shrink to the VMEM budget: sublane axis first, then lane axis -----
    if blk_bytes(tr, tc) > budget_bytes:
        if r_dim > 8:
            max_tr = budget_bytes // (2 * frames * tc * itemsize)
            tr = max(8, min(r_dim, (max_tr // 8) * 8))
        if blk_bytes(tr, tc) > budget_bytes and c_dim > 128:
            max_tc = budget_bytes // (2 * frames * tr * itemsize)
            tc = max(128, min(c_dim, (max_tc // 128) * 128))
        # If even the minimal per-frame block exceeds the budget we keep it and
        # raise vmem_limit_bytes accordingly at the call site.

    # ---- ensure >= 2 parallel grid steps (engage both v7x TensorCores) -----
    steps = n_batch * _ceil_div(r_dim, tr) * _ceil_div(c_dim, tc)
    if steps < 2:
        if r_dim > 8:
            tr = max(8, ((r_dim // 2) // 8) * 8)
        elif c_dim > 128:
            tc = max(128, ((c_dim // 2) // 128) * 128)
        # else: payload too small to split; a single step is fine.

    return r_dim, c_dim, tr, tc


@functools.partial(jax.jit, static_argnames=("n_segment",))
def temporal_pool_pallas(x, n_segment):
    nt, c, h, w = x.shape
    assert nt % n_segment == 0, "nt must be divisible by n_segment"
    assert n_segment % 2 == 0, "n_segment must be even"
    n_batch = nt // n_segment
    t_out = n_segment // 2
    d = c * h * w
    itemsize = jnp.dtype(x.dtype).itemsize

    physical_vmem = _physical_vmem_bytes()
    # Target double-buffered block footprint ~= physical/4:
    # 32 MiB on v5e/v6e (128 MiB VMEM), 16 MiB on v7x (64 MiB VMEM).
    budget = min(max(physical_vmem // 4, 16 * _MIB), 48 * _MIB)

    r_dim, c_dim, tr, tc = _choose_tiling(d, itemsize, n_segment, t_out,
                                          n_batch, budget)

    # Free, row-major reshape: (nt, c, h, w) -> (n_batch, n_segment, R, C).
    xr = x.reshape(n_batch, n_segment, r_dim, c_dim)

    def kernel(x_ref, o_ref):
        # x_ref: (n_segment, TR, TC), o_ref: (t_out, TR, TC).
        # Output frame t = max over input frames {max(2t-1, 0), 2t, 2t+1};
        # the right frame is carried into the next iteration so each input
        # frame is read from VMEM exactly once.
        if t_out <= 16:  # small static unroll for typical n_segment (8/16/32)
            prev = x_ref[0]
            for t in range(t_out):
                right = x_ref[2 * t + 1]
                o_ref[t] = jnp.maximum(jnp.maximum(prev, x_ref[2 * t]), right)
                prev = right
        else:            # rolled loop bounds vreg live ranges for large t_out
            def body(t, prev):
                right = x_ref[2 * t + 1]
                o_ref[t] = jnp.maximum(jnp.maximum(prev, x_ref[2 * t]), right)
                return right
            lax.fori_loop(0, t_out, body, x_ref[0])

    grid = (n_batch, _ceil_div(r_dim, tr), _ceil_div(c_dim, tc))

    frames = n_segment + t_out
    vmem_need = 2 * frames * tr * tc * itemsize      # double-buffered in + out
    ceiling = (3 * physical_vmem) // 4               # ~96 MiB v5e/v6e, ~48 MiB v7x
    vmem_limit = min(max(2 * vmem_need, 32 * _MIB), ceiling)
    vmem_limit = max(vmem_limit, vmem_need + 1 * _MIB)   # never below the need
    vmem_limit = int(min(vmem_limit, physical_vmem))

    out_elems = n_batch * t_out * d
    cost = pl.CostEstimate(
        flops=2 * out_elems,     # two compares per output element
        transcendentals=0,
        bytes_accessed=(n_batch * n_segment * d + out_elems) * itemsize)

    out = pl.pallas_call(
        kernel,
        out_shape=jax.ShapeDtypeStruct((n_batch, t_out, r_dim, c_dim), x.dtype),
        grid_spec=pltpu.PrefetchScalarGridSpec(
            num_scalar_prefetch=0,
            grid=grid,
            in_specs=[
                pl.BlockSpec((None, n_segment, tr, tc),
                             lambda b, r, l: (b, 0, r, l)),
            ],
            out_specs=pl.BlockSpec((None, t_out, tr, tc),
                                   lambda b, r, l: (b, 0, r, l)),
        ),
        compiler_params=pltpu.CompilerParams(
            dimension_semantics=("parallel", "parallel", "parallel"),
            vmem_limit_bytes=vmem_limit),
        cost_estimate=cost,
    )(xr)

    # Free reshape back: (n_batch, t_out, R, C) -> (nt//2, c, h, w).
    return out.reshape(nt // 2, c, h, w)


def temporal_pool_module_forward(x, n_segment):
    x = temporal_pool_pallas(x, n_segment)
    # TODO(synk): self.net is an arbitrary user-supplied submodule (no defined
    # architecture here); treated as identity. Fusing the temporal max into its
    # first layer's input pipeline is the remaining structural win (halves this
    # stage's end-to-end HBM traffic).
    return x


def _temporal_pool_ref(x, n_segment):
    """Pure-jnp reference of the PyTorch temporal_pool."""
    nt, c, h, w = x.shape
    n_batch = nt // n_segment
    xr = x.reshape(n_batch, n_segment, c, h, w)
    pad = jnp.full((n_batch, 1, c, h, w), -jnp.inf, dtype=x.dtype)
    xp = jnp.concatenate([pad, xr, pad], axis=1)          # (N, T+2, C, H, W)
    wins = jnp.stack(
        [xp[:, 0:-2:2], xp[:, 1:-1:2], xp[:, 2::2]], axis=0
    )                                                      # (3, N, T/2, C, H, W)
    out = wins.max(axis=0)
    return out.reshape(nt // 2, c, h, w)


if __name__ == "__main__":
    key = jax.random.PRNGKey(0)

    # --- main case: lane-aligned payload (d = 4*16*16 = 1024) ---------------
    n_segment = 8
    n_batch = 2
    c, h, w = 4, 16, 16
    nt = n_batch * n_segment  # 16
    x = jax.random.normal(key, (nt, c, h, w), dtype=jnp.float32)

    y = temporal_pool_module_forward(x, n_segment)
    y = jax.block_until_ready(y)
    y_ref = _temporal_pool_ref(x, n_segment)
    assert y.shape == (nt // 2, c, h, w), y.shape
    assert jnp.allclose(y, y_ref, atol=1e-6, rtol=1e-6), "f32 mismatch"

    # bf16 path: max is exact selection, kernel never upcasts.
    xb = x.astype(jnp.bfloat16)
    yb = jax.block_until_ready(temporal_pool_pallas(xb, n_segment))
    assert yb.dtype == jnp.bfloat16
    assert jnp.array_equal(yb, _temporal_pool_ref(xb, n_segment)), "bf16 mismatch"

    # --- awkward payload (d = 3*7*9 = 189, not divisible by 128) ------------
    x2 = jax.random.normal(jax.random.fold_in(key, 1), (nt, 3, 7, 9),
                           dtype=jnp.float32)
    y2 = jax.block_until_ready(temporal_pool_pallas(x2, n_segment))
    assert jnp.allclose(y2, _temporal_pool_ref(x2, n_segment),
                        atol=1e-6, rtol=1e-6), "awkward-payload mismatch"

    # --- n_batch == 1 (exercises the forced >=2-step megacore split) --------
    x3 = jax.random.normal(jax.random.fold_in(key, 2), (n_segment, 8, 16, 16),
                           dtype=jnp.float32)
    y3 = jax.block_until_ready(temporal_pool_pallas(x3, n_segment))
    assert jnp.allclose(y3, _temporal_pool_ref(x3, n_segment),
                        atol=1e-6, rtol=1e-6), "n_batch=1 mismatch"

    print("KERNEL_OK")
</pallas_src>

<mosaic_0001>
module attributes {stable_mosaic.version = 11 : i64} {
  func.func @kernel(%arg0: i32, %arg1: i32, %arg2: i32, %arg3: memref<1x8x1x1024xf32, #tpu.memory_space<vmem>>, %arg4: memref<1x4x1x1024xf32, #tpu.memory_space<vmem>>) attributes {dimension_semantics = [#tpu.dimension_semantics<parallel>, #tpu.dimension_semantics<parallel>, #tpu.dimension_semantics<parallel>], iteration_bounds = array<i64: 2, 1, 1>, scalar_prefetch = 0 : i64, scratch_operands = 0 : i64, tpu.core_type = #tpu.core_type<tc>, window_params = [{transform_indices = @transform_0, window_bounds = array<i64: 1, 8, 1, 1024>}, {transform_indices = @transform_1, window_bounds = array<i64: 1, 4, 1, 1024>}]} {
    %c0 = arith.constant 0 : index
    %c0_0 = arith.constant 0 : index
    %c0_1 = arith.constant 0 : index
    %c0_2 = arith.constant 0 : index
    %0 = vector.load %arg3[%c0, %c0_0, %c0_1, %c0_2] : memref<1x8x1x1024xf32, #tpu.memory_space<vmem>>, vector<1x1x1x1024xf32>
    %1 = vector.shape_cast %0 : vector<1x1x1x1024xf32> to vector<1x1024xf32>
    %c0_3 = arith.constant 0 : index
    %c1 = arith.constant 1 : index
    %c0_4 = arith.constant 0 : index
    %c0_5 = arith.constant 0 : index
    %2 = vector.load %arg3[%c0_3, %c1, %c0_4, %c0_5] : memref<1x8x1x1024xf32, #tpu.memory_space<vmem>>, vector<1x1x1x1024xf32>
    %3 = vector.shape_cast %2 : vector<1x1x1x1024xf32> to vector<1x1024xf32>
    %c0_6 = arith.constant 0 : index
    %c0_7 = arith.constant 0 : index
    %c0_8 = arith.constant 0 : index
    %c0_9 = arith.constant 0 : index
    %4 = vector.load %arg3[%c0_6, %c0_7, %c0_8, %c0_9] : memref<1x8x1x1024xf32, #tpu.memory_space<vmem>>, vector<1x1x1x1024xf32>
    %5 = vector.shape_cast %4 : vector<1x1x1x1024xf32> to vector<1x1024xf32>
    %6 = arith.maximumf %1, %5 : vector<1x1024xf32>
    %7 = arith.maximumf %6, %3 : vector<1x1024xf32>
    %c0_10 = arith.constant 0 : index
    %c0_11 = arith.constant 0 : index
    %c0_12 = arith.constant 0 : index
    %c0_13 = arith.constant 0 : index
    %8 = vector.load %arg4[%c0_10, %c0_11, %c0_12, %c0_13] : memref<1x4x1x1024xf32, #tpu.memory_space<vmem>>, vector<1x1x1x1024xf32>
    %9 = vector.shape_cast %8 : vector<1x1x1x1024xf32> to vector<1x1024xf32>
    %10 = vector.shape_cast %7 : vector<1x1024xf32> to vector<1x1x1x1024xf32>
    tpu.vector_store %arg4[%c0_10, %c0_11, %c0_12, %c0_13], %10 {strides = array<i32>} : memref<1x4x1x1024xf32, #tpu.memory_space<vmem>>, vector<1x1x1x1024xf32>,
    %c0_14 = arith.constant 0 : index
    %c3 = arith.constant 3 : index
    %c0_15 = arith.constant 0 : index
    %c0_16 = arith.constant 0 : index
    %11 = vector.load %arg3[%c0_14, %c3, %c0_15, %c0_16] : memref<1x8x1x1024xf32, #tpu.memory_space<vmem>>, vector<1x1x1x1024xf32>
    %12 = vector.shape_cast %11 : vector<1x1x1x1024xf32> to vector<1x1024xf32>
    %c0_17 = arith.constant 0 : index
    %c2 = arith.constant 2 : index
    %c0_18 = arith.constant 0 : index
    %c0_19 = arith.constant 0 : index
    %13 = vector.load %arg3[%c0_17, %c2, %c0_18, %c0_19] : memref<1x8x1x1024xf32, #tpu.memory_space<vmem>>, vector<1x1x1x1024xf32>
    %14 = vector.shape_cast %13 : vector<1x1x1x1024xf32> to vector<1x1024xf32>
    %15 = arith.maximumf %3, %14 : vector<1x1024xf32>
    %16 = arith.maximumf %15, %12 : vector<1x1024xf32>
    %c0_20 = arith.constant 0 : index
    %c1_21 = arith.constant 1 : index
    %c0_22 = arith.constant 0 : index
    %c0_23 = arith.constant 0 : index
    %17 = vector.load %arg4[%c0_20, %c1_21, %c0_22, %c0_23] : memref<1x4x1x1024xf32, #tpu.memory_space<vmem>>, vector<1x1x1x1024xf32>
    %18 = vector.shape_cast %17 : vector<1x1x1x1024xf32> to vector<1x1024xf32>
    %19 = vector.shape_cast %16 : vector<1x1024xf32> to vector<1x1x1x1024xf32>
    tpu.vector_store %arg4[%c0_20, %c1_21, %c0_22, %c0_23], %19 {strides = array<i32>} : memref<1x4x1x1024xf32, #tpu.memory_space<vmem>>, vector<1x1x1x1024xf32>,
    %c0_24 = arith.constant 0 : index
    %c5 = arith.constant 5 : index
    %c0_25 = arith.constant 0 : index
    %c0_26 = arith.constant 0 : index
    %20 = vector.load %arg3[%c0_24, %c5, %c0_25, %c0_26] : memref<1x8x1x1024xf32, #tpu.memory_space<vmem>>, vector<1x1x1x1024xf32>
    %21 = vector.shape_cast %20 : vector<1x1x1x1024xf32> to vector<1x1024xf32>
    %c0_27 = arith.constant 0 : index
    %c4 = arith.constant 4 : index
    %c0_28 = arith.constant 0 : index
    %c0_29 = arith.constant 0 : index
    %22 = vector.load %arg3[%c0_27, %c4, %c0_28, %c0_29] : memref<1x8x1x1024xf32, #tpu.memory_space<vmem>>, vector<1x1x1x1024xf32>
    %23 = vector.shape_cast %22 : vector<1x1x1x1024xf32> to vector<1x1024xf32>
    %24 = arith.maximumf %12, %23 : vector<1x1024xf32>
    %25 = arith.maximumf %24, %21 : vector<1x1024xf32>
    %c0_30 = arith.constant 0 : index
    %c2_31 = arith.constant 2 : index
    %c0_32 = arith.constant 0 : index
    %c0_33 = arith.constant 0 : index
    %26 = vector.load %arg4[%c0_30, %c2_31, %c0_32, %c0_33] : memref<1x4x1x1024xf32, #tpu.memory_space<vmem>>, vector<1x1x1x1024xf32>
    %27 = vector.shape_cast %26 : vector<1x1x1x1024xf32> to vector<1x1024xf32>
    %28 = vector.shape_cast %25 : vector<1x1024xf32> to vector<1x1x1x1024xf32>
    tpu.vector_store %arg4[%c0_30, %c2_31, %c0_32, %c0_33], %28 {strides = array<i32>} : memref<1x4x1x1024xf32, #tpu.memory_space<vmem>>, vector<1x1x1x1024xf32>,
    %c0_34 = arith.constant 0 : index
    %c7 = arith.constant 7 : index
    %c0_35 = arith.constant 0 : index
    %c0_36 = arith.constant 0 : index
    %29 = vector.load %arg3[%c0_34, %c7, %c0_35, %c0_36] : memref<1x8x1x1024xf32, #tpu.memory_space<vmem>>, vector<1x1x1x1024xf32>
    %30 = vector.shape_cast %29 : vector<1x1x1x1024xf32> to vector<1x1024xf32>
    %c0_37 = arith.constant 0 : index
    %c6 = arith.constant 6 : index
    %c0_38 = arith.constant 0 : index
    %c0_39 = arith.constant 0 : index
    %31 = vector.load %arg3[%c0_37, %c6, %c0_38, %c0_39] : memref<1x8x1x1024xf32, #tpu.memory_space<vmem>>, vector<1x1x1x1024xf32>
    %32 = vector.shape_cast %31 : vector<1x1x1x1024xf32> to vector<1x1024xf32>
    %33 = arith.maximumf %21, %32 : vector<1x1024xf32>
    %34 = arith.maximumf %33, %30 : vector<1x1024xf32>
    %c0_40 = arith.constant 0 : index
    %c3_41 = arith.constant 3 : index
    %c0_42 = arith.constant 0 : index
    %c0_43 = arith.constant 0 : index
    %35 = vector.load %arg4[%c0_40, %c3_41, %c0_42, %c0_43] : memref<1x4x1x1024xf32, #tpu.memory_space<vmem>>, vector<1x1x1x1024xf32>
    %36 = vector.shape_cast %35 : vector<1x1x1x1024xf32> to vector<1x1024xf32>
    %37 = vector.shape_cast %34 : vector<1x1024xf32> to vector<1x1x1x1024xf32>
    tpu.vector_store %arg4[%c0_40, %c3_41, %c0_42, %c0_43], %37 {strides = array<i32>} : memref<1x4x1x1024xf32, #tpu.memory_space<vmem>>, vector<1x1x1x1024xf32>,
    return
  }
  func.func @transform_0(%arg0: i32, %arg1: i32, %arg2: i32) -> (i32, i32, i32, i32) {
    %c0_i32 = arith.constant 0 : i32
    %c0_i32_0 = arith.constant 0 : i32
    return %arg0, %c0_i32, %arg1, %arg2 : i32, i32, i32, i32
  }
  func.func @transform_1(%arg0: i32, %arg1: i32, %arg2: i32) -> (i32, i32, i32, i32) {
    %c0_i32 = arith.constant 0 : i32
    %c0_i32_0 = arith.constant 0 : i32
    return %arg0, %c0_i32, %arg1, %arg2 : i32, i32, i32, i32
  }
}

</mosaic_0001>

<bundles_post_ra>
// kernel: temporal_pool_pallas.1
= control target key start
LH: loop header
LB: loop body
LE: loop exit
PB: predicated region body
PF: predicated region fallthrough
CT: control target
= control target key end

     0   :  { %s391_s6 = smov 0   ;;  %s393_s7 = smov 0   ;;  %s424_s0 = inlined_call_operand.vmem [shape: f32[2,8,1,1024], index: 0, kind: input, shape index: {}]   ;;  %s425_s1 = inlined_call_operand.vmem [shape: f32[2,4,1,1024], index: 1, kind: output, shape index: {}]  }
   0x1   :  { %s395_s8 = smov 0  }
   0x2 LB: > { %s30_s9 = sadd.s32 1, %s375_s7  ;;  %p318_p0 = scmp.ge.s32.totalorder %s379_s8, 1  ;;  %s379_s8 = sphi %s395_s8, %s11_s8   ;;  %s375_s7 = sphi %s393_s7, %s427_s7   ;;  %s371_s6 = sphi %s391_s6, %s426_s6  }
   0x3   : > { %p32_p1 = scmp.ge.s32.totalorder %s30_s9, 2  ;;  %p122_p2 = scmp.lt.s32.totalorder %s379_s8, 3 }
   0x5   : > { %s429_s9 = smov (%p32_p1, %s30_s9), 0  ;;  %p123_p3 = pnand %p318_p0, %p122_p2 }
   0x6   : > { %p157_p4 = scmp.lt.s32.totalorder (!%p123_p3), %s371_s6, 1 }
   0x7   : > { %126 = sbr.rel (%p123_p3) target bundleno = 25 (0x19), region = 24 }
   0xe   : > { %s431_s6 = smov (!%p157_p4, %s371_s6), 1 }
   0xf   : > { %s319_s10 = sshll.u32 %s431_s6, 6  ;;  %s320_s11 = sshll.u32 %s431_s6, 5 }
  0x10   : > { %s167_s14 = scalar_lea.vmem %s424_s0, %s319_s10  ;;  %s180_s17 = scalar_lea.vmem %s425_s1, %s320_s11 }
  0x11   : > { %v182_v0 = vld [vmem:[%s167_s14] sm:$0xff]  ;;  %v321_v1 = vld [vmem:[%s167_s14 + $0x8] sm:$0xff]  ;;  %v322_v2 = vld [vmem:[%s167_s14 + $0x18] sm:$0xff] }
  0x12   : > { %v185_v3 = vmax.f32 %v182_v0, %v321_v1  ;;  %v323_v4 = vld [vmem:[%s167_s14 + $0x10] sm:$0xff]  ;;  %v325_v5 = vld [vmem:[%s167_s14 + $0x28] sm:$0xff]  ;;  %v326_v6 = vld [vmem:[%s167_s14 + $0x20] sm:$0xff] }
  0x13   : > { %v191_v7 = vmax.f32 %v321_v1, %v323_v4  ;;  %v199_v8 = vmax.f32 %v322_v2, %v326_v6  ;;  %v328_v9 = vld [vmem:[%s167_s14 + $0x38] sm:$0xff]  ;;  %v329_v10 = vld [vmem:[%s167_s14 + $0x30] sm:$0xff] }
  0x14   : > { %186 = vst [vmem:[%s180_s17] sm:$0xff] %v185_v3  ;;  %v207_v11 = vmax.f32 %v325_v5, %v329_v10 }
  0x15   : > { %v192_v12 = vmax.f32 %v191_v7, %v322_v2  ;;  %v200_v13 = vmax.f32 %v199_v8, %v325_v5 }
  0x16   : > { %v208_v14 = vmax.f32 %v207_v11, %v328_v9 }
  0x17   : > { %324 = vst [vmem:[%s180_s17 + $0x8] sm:$0xff] %v192_v12  ;;  %327 = vst [vmem:[%s180_s17 + $0x10] sm:$0xff] %v200_v13 }
  0x18   : > { %330 = vst [vmem:[%s180_s17 + $0x18] sm:$0xff] %v208_v14 }
  0x19 PF: > { %s11_s8 = sadd.s32 1, %s379_s8   ;;  %s426_s6 = smov %s375_s7 }
  0x1a   : > { %p8_p5 = scmp.ge.s32.totalorder %s11_s8, 4   ;;  %s427_s7 = smov %s429_s9 }
  0x1c   :  { %10 = sbr.rel (!%p8_p5) target bundleno = 2 (0x2), region = 64 }

</bundles_post_ra>
